<compile_context>
chip_gen: v7x
topology: tpu7x:2x2x1
jax: 0.10.0
libtpu: 0.0.40
codegen_flags: <defaults>
</compile_context>

<pallas_src>
import math

import numpy as np
import jax
import jax.numpy as jnp
from jax.experimental import pallas as pl
from jax.experimental.pallas import tpu as pltpu


def _fourier_kernel(rm_ref, grid_ref, out_ref):
    """Compute sin/cos(2*pi*(gy*RM[0,k] + gx*RM[1,k])) for one tile of pixels.

    rm_ref  : (F/2, 2)       2*pi * random_matrix.T (resident across grid steps)
    grid_ref: (2, tile)      row 0 = y/(H-1), row 1 = x/(W-1) per flat pixel
    out_ref : (2, F/2, tile) slab 0 = sin(proj), slab 1 = cos(proj)
    """
    rm = rm_ref[...].astype(jnp.float32)            # (F/2, 2)
    gy = grid_ref[0:1, :].astype(jnp.float32)       # (1, tile)
    gx = grid_ref[1:2, :].astype(jnp.float32)       # (1, tile)
    # projection = (2*pi*RM[0])*gy + (2*pi*RM[1])*gx  -- K=2 contraction unrolled
    # as a broadcast multiply-add on the VPU.
    proj = rm[:, 0:1] * gy + rm[:, 1:2] * gx        # (F/2, tile), f32
    out_ref[0, :, :] = jnp.sin(proj).astype(out_ref.dtype)
    out_ref[1, :, :] = jnp.cos(proj).astype(out_ref.dtype)


def _choose_tile(HW, fh, dtype_bytes, *, vmem_budget=8 << 20, max_tile=8192):
    """Largest 128-multiple pixel tile fitting a conservative VMEM budget."""
    # double-buffered output block (2*fh*tile*dtype) + grid block (2*tile*4)
    per_pixel = 2 * (2 * fh * dtype_bytes + 2 * 4)
    cap = max(128, min(max_tile, (vmem_budget // per_pixel) // 128 * 128))
    hw128 = pl.cdiv(HW, 128) * 128
    tile = min(cap, hw128)
    # Keep at least 2 grid steps when there is enough work (v7x: 2 TCs/chip).
    if hw128 > 128 and pl.cdiv(hw128, tile) < 2:
        tile = pl.cdiv(hw128 // 2, 128) * 128
    return tile


def random_fourier_forward(x, random_matrix):
    """Pallas equivalent of RandomFourier.forward. x: (B, C, H, W) NCHW."""
    B, C, H, W = x.shape
    fh = random_matrix.shape[1]                 # fourier_channels // 2
    F = 2 * fh
    HW = H * W

    tile = _choose_tile(HW, fh, jnp.dtype(x.dtype).itemsize)
    HW_pad = pl.cdiv(HW, tile) * tile
    grid = (HW_pad // tile,)

    # Fold constants at trace time: 2*pi scale + transpose to (F/2, 2).
    rm_scaled = (2.0 * math.pi) * random_matrix.T.astype(jnp.float32)    # (F/2, 2)

    # Normalized pixel grid, flattened to (2, HW_pad) so the kernel needs no
    # division / index-recovery math (pixel p = h*W + w -> (gy[h], gx[w])).
    gy = jnp.linspace(0.0, 1.0, H, dtype=jnp.float32)    # == torch.linspace(0,1,H)
    gx = jnp.linspace(0.0, 1.0, W, dtype=jnp.float32)
    grid_flat = jnp.stack([jnp.repeat(gy, W), jnp.tile(gx, H)], axis=0)  # (2, HW)
    if HW_pad != HW:
        grid_flat = jnp.pad(grid_flat, ((0, 0), (0, HW_pad - HW)))

    feats = pl.pallas_call(
        _fourier_kernel,
        grid=grid,
        in_specs=[
            pl.BlockSpec((fh, 2), lambda i: (0, 0)),       # random matrix, resident
            pl.BlockSpec((2, tile), lambda i: (0, i)),     # pixel grid tile
        ],
        out_specs=pl.BlockSpec((2, fh, tile), lambda i: (0, 0, i)),
        out_shape=jax.ShapeDtypeStruct((2, fh, HW_pad), x.dtype),
        compiler_params=pltpu.CompilerParams(
            dimension_semantics=("parallel",)),
    )(rm_scaled, grid_flat)

    # (2, F/2, HW) -> (F, H, W) is a free row-major reshape: rows 0:F/2 are sin,
    # F/2:F are cos, exactly matching torch.cat([sin(proj), cos(proj)], dim=1).
    feats = feats[:, :, :HW].reshape(F, H, W)

    # The grid is identical for every batch element (PyTorch just .repeat()s it):
    # broadcast over B; feats is already in final layout & dtype so XLA can fuse
    # broadcast + concat into a single copy.
    # TODO(synk): the concat with x is still a full HBM copy; pushing it into the
    # consumer of this module would remove that epilogue entirely.
    feats_b = jnp.broadcast_to(feats[None], (B, F, H, W))
    return jnp.concatenate([x, feats_b], axis=1)            # (B, C+F, H, W)


def _reference(x, random_matrix):
    """Pure-JAX reference mirroring the PyTorch forward."""
    B, C, H, W = x.shape
    gy = jnp.linspace(0.0, 1.0, H)
    gx = jnp.linspace(0.0, 1.0, W)
    gyy, gxx = jnp.meshgrid(gy, gx, indexing="ij")
    grid = jnp.broadcast_to(jnp.stack([gyy, gxx])[None], (B, 2, H, W))
    proj = 2.0 * np.pi * jnp.einsum("bchw,cf->bfhw", grid, random_matrix)
    return jnp.concatenate([x, jnp.sin(proj), jnp.cos(proj)], axis=1)


if __name__ == "__main__":
    key = jax.random.PRNGKey(0)
    k_x, k_rm = jax.random.split(key)

    B, C, H, W = 2, 4, 16, 16
    fourier_channels = 8            # must be even; adds F channels to the output

    x = jax.random.normal(k_x, (B, C, H, W), dtype=jnp.float32)
    # deterministic stand-in for the torch.randn((2, F//2)) buffer
    random_matrix = jax.random.normal(k_rm, (2, fourier_channels // 2),
                                      dtype=jnp.float32)

    out = random_fourier_forward(x, random_matrix)
    out = jax.block_until_ready(out)

    ref = _reference(x, random_matrix)
    assert out.shape == (B, C + fourier_channels, H, W), out.shape
    if not np.allclose(np.asarray(out), np.asarray(ref), rtol=1e-4, atol=1e-4):
        raise SystemExit("mismatch vs reference")

    print("KERNEL_OK")
</pallas_src>

<mosaic_0001>
module attributes {stable_mosaic.version = 11 : i64} {
  func.func @_fourier_kernel(%arg0: i32, %arg1: memref<4x2xf32, #tpu.memory_space<vmem>>, %arg2: memref<2x128xf32, #tpu.memory_space<vmem>>, %arg3: memref<2x4x128xf32, #tpu.memory_space<vmem>>) attributes {dimension_semantics = [#tpu.dimension_semantics<parallel>], iteration_bounds = array<i64: 2>, scalar_prefetch = 0 : i64, scratch_operands = 0 : i64, tpu.core_type = #tpu.core_type<tc>, window_params = [{pipeline_mode = #tpu.pipeline_mode<synchronous>, transform_indices = @transform_0, window_bounds = array<i64: 4, 2>}, {transform_indices = @transform_1, window_bounds = array<i64: 2, 128>}, {transform_indices = @transform_2, window_bounds = array<i64: 2, 4, 128>}]} {
    %c0 = arith.constant 0 : index
    %c0_0 = arith.constant 0 : index
    %0 = vector.load %arg1[%c0, %c0_0] : memref<4x2xf32, #tpu.memory_space<vmem>>, vector<4x2xf32>
    %c0_1 = arith.constant 0 : index
    %c0_2 = arith.constant 0 : index
    %1 = vector.load %arg2[%c0_1, %c0_2] : memref<2x128xf32, #tpu.memory_space<vmem>>, vector<1x128xf32>
    %c1 = arith.constant 1 : index
    %c0_3 = arith.constant 0 : index
    %2 = vector.load %arg2[%c1, %c0_3] : memref<2x128xf32, #tpu.memory_space<vmem>>, vector<1x128xf32>
    %3 = vector.extract_strided_slice %0 {offsets = [0, 0], sizes = [4, 1], strides = [1, 1]} : vector<4x2xf32> to vector<4x1xf32>
    %4 = vector.broadcast %3 : vector<4x1xf32> to vector<4x128xf32>
    %5 = vector.broadcast %1 : vector<1x128xf32> to vector<4x128xf32>
    %6 = arith.mulf %4, %5 : vector<4x128xf32>
    %7 = vector.extract_strided_slice %0 {offsets = [0, 1], sizes = [4, 1], strides = [1, 1]} : vector<4x2xf32> to vector<4x1xf32>
    %8 = vector.broadcast %7 : vector<4x1xf32> to vector<4x128xf32>
    %9 = vector.broadcast %2 : vector<1x128xf32> to vector<4x128xf32>
    %10 = arith.mulf %8, %9 : vector<4x128xf32>
    %11 = arith.addf %6, %10 : vector<4x128xf32>
    %12 = math.sin %11 : vector<4x128xf32>
    %c0_4 = arith.constant 0 : index
    %c0_5 = arith.constant 0 : index
    %c0_6 = arith.constant 0 : index
    %13 = vector.load %arg3[%c0_4, %c0_5, %c0_6] : memref<2x4x128xf32, #tpu.memory_space<vmem>>, vector<1x4x128xf32>
    %14 = vector.shape_cast %13 : vector<1x4x128xf32> to vector<4x128xf32>
    %15 = vector.shape_cast %12 : vector<4x128xf32> to vector<1x4x128xf32>
    tpu.vector_store %arg3[%c0_4, %c0_5, %c0_6], %15 {strides = array<i32>} : memref<2x4x128xf32, #tpu.memory_space<vmem>>, vector<1x4x128xf32>,
    %16 = math.cos %11 : vector<4x128xf32>
    %c1_7 = arith.constant 1 : index
    %c0_8 = arith.constant 0 : index
    %c0_9 = arith.constant 0 : index
    %17 = vector.load %arg3[%c1_7, %c0_8, %c0_9] : memref<2x4x128xf32, #tpu.memory_space<vmem>>, vector<1x4x128xf32>
    %18 = vector.shape_cast %17 : vector<1x4x128xf32> to vector<4x128xf32>
    %19 = vector.shape_cast %16 : vector<4x128xf32> to vector<1x4x128xf32>
    tpu.vector_store %arg3[%c1_7, %c0_8, %c0_9], %19 {strides = array<i32>} : memref<2x4x128xf32, #tpu.memory_space<vmem>>, vector<1x4x128xf32>,
    return
  }
  func.func @transform_0(%arg0: i32) -> (i32, i32) {
    %c0_i32 = arith.constant 0 : i32
    %c0_i32_0 = arith.constant 0 : i32
    %c0_i32_1 = arith.constant 0 : i32
    return %c0_i32, %c0_i32_0 : i32, i32
  }
  func.func @transform_1(%arg0: i32) -> (i32, i32) {
    %c0_i32 = arith.constant 0 : i32
    %c0_i32_0 = arith.constant 0 : i32
    return %c0_i32, %arg0 : i32, i32
  }
  func.func @transform_2(%arg0: i32) -> (i32, i32, i32) {
    %c0_i32 = arith.constant 0 : i32
    %c0_i32_0 = arith.constant 0 : i32
    %c0_i32_1 = arith.constant 0 : i32
    return %c0_i32, %c0_i32_0, %arg0 : i32, i32, i32
  }
}

</mosaic_0001>

<bundles_post_ra>
// kernel: tpu_custom_call.1
= control target key start
LH: loop header
LB: loop body
LE: loop exit
PB: predicated region body
PF: predicated region fallthrough
CT: control target
= control target key end

     0   :  { %7 = vsyncpa [#allocation3], 0  ;;  %s750_s0 = inlined_call_operand.vmem [shape: f32[4,2], index: 0, kind: input, shape index: {}]   ;;  %s751_s1 = inlined_call_operand.vmem [shape: f32[2,256], index: 1, kind: input, shape index: {}]   ;;  %s752_s2 = inlined_call_operand.hbm [shape: f32[2,4,256], index: 2, kind: output, shape index: {}]  }
   0x1   :  { %9 = vsyncpa [#allocation3 + $0x1], 0  ;;  %s619_s9 = smov 0   ;;  %s621_s10 = smov 0  }
   0x2   :  { %s623_s11 = smov 0   ;;  %s625_s12 = smov 0  }
   0x3 LB: > { %s640_s13 = sadd.s32 4294967295, %s590_s12   ;;  %s447_s14 = sadd.s32 4294967294, %s590_s12   ;;  %s590_s12 = sphi %s625_s12, %s758_s12   ;;  %s586_s11 = sphi %s623_s11, %s757_s11   ;;  %s582_s10 = sphi %s621_s10, %s756_s10   ;;  %s578_s9 = sphi %s619_s9, %s755_s9  }
   0x4   : > { %s644_s15 = sadd.s32 1, %s590_s12   ;;  %s69_s16 = sadd.s32 1, %s586_s11 }
   0x5   : > { %s66_s17 = ssub.s32 %s590_s12, %s644_s15  ;;  %p79_p0 = scmp.ne.s32.totalorder %s586_s11, %s582_s10 }
   0x6   : > { %p67_p1 = scmp.eq.s32.totalorder %s66_s17, 0  ;;  %p80_p2 = scmp.eq.s32.totalorder %s640_s13, 1 }
   0x7   : > { %p85_p3 = scmp.ne.s32.totalorder %s582_s10, %s578_s9  ;;  %p86_p4 = scmp.eq.s32.totalorder %s447_s14, 1 }
   0x8   : > { %s655_s18 = scalar_select %p67_p1, %s586_s11, %s69_s16  }
   0x9   : > { %p657_p5 = por %p80_p2, %p79_p0  ;;  %p661_p6 = por %p86_p4, %p85_p3 }
   0xa   : > { %p450_p7 = scmp.ge.s32.totalorder %s590_s12, 1  ;;  %p114_p8 = scmp.lt.s32.totalorder %s590_s12, 3 }
   0xc   : > { %p115_p9 = pnand %p450_p7, %p114_p8 }
   0xd   : > { %v139_v0 = vld [vmem:[%s750_s0] sm:$0xf] (!%p115_p9)  ;;  %v592_v1 = vmov (!%p115_p9), 0   ;;  %v593_v2 = vmov (!%p115_p9), 1   ;;  %p135_p10 = scmp.lt.s32.totalorder (!%p115_p9), %s640_s13, 1  ;;  %s132_s28 = sand.u32 (!%p115_p9), 1, %s582_s10  }
   0xe   : > { %118 = sbr.rel (%p115_p9) target bundleno = 247 (0xf7), region = 28  ;;  %522 = vset.pattern.permute.xlu0 (!%p115_p9), %v592_v1  ;;  %v594_v20 = vmov (!%p115_p9), 683565275   ;;  %v595_v22 = vmov (!%p115_p9), 2475754826   ;;  %s451_s29 = sshll.u32 (!%p115_p9), %s132_s28, 3 }
   0xf   : > { %144 = vperm.xlu0 (!%p115_p9), %522, %v139_v0   ;;  %v596_v25 = vmov (!%p115_p9), 2131351028   ;;  %v597_v28 = vmov (!%p115_p9), 2102212464   ;;  %v598_v31 = vmov (!%p115_p9), 920167782  }
  0x10   : > { %v599_v34 = vmov (!%p115_p9), 1326507024   ;;  %s465_s30 = sshll.u32 (!%p115_p9), %s640_s13, 6  ;;  %s134_s3 = scalar_lea.vmem (!%p115_p9), [#allocation2], %s451_s29 }
  0x11   : > { %s385_s4 = sshll.u32 (!%p115_p9), %s134_s3, 4  ;;  %s702_s7 = scalar_lea.hbm (!%p115_p9), %s752_s2, %s465_s30  ;;  %s704_s4 = int_to_ptr.vmem [resolvable:$true] %s385_s4 }
  0x12   : > { %s709_s8 = scalar_lea.sflag (!%p115_p9), [#allocation3], %s132_s28  ;;  %s600_s14 = smov (!%p115_p9), [#allocation2]  }
  0x13   : > { %523 = vset.pattern.permute.xlu0 (!%p115_p9), %v593_v2  ;;  %s532_s16 = sshll.u32 (!%p115_p9), %s600_s14, 4  ;;  %s533_s16 = int_to_ptr.vmem [resolvable:$false] %s532_s16 }
  0x14   : > { %153 = vperm.xlu0 (!%p115_p9), %523, %v139_v0   ;;  %s534_s17 = scalar_lea.vmem (!%p115_p9), %s533_s16, 256  ;;  %p535_p0 = scmp.lt.s32.totalorder (!%p115_p9), %s704_s4, %s533_s16 }
  0x15   : > { %s136_s23 = scalar_select %p135_p10, %s640_s13, 1 }
  0x16   : > { %s528_s13 = scalar_lea.vmem %s704_s4, 128 }
  0x17   : > { %s452_s24 = sshll.u32 %s136_s23, 1  ;;  %p529_p11 = scmp.ne.s32.totalorder %s704_s4, %s528_s13 }
  0x18   : > { %s138_s27 = scalar_lea.vmem %s751_s1, %s452_s24  ;;  %p536_p1 = scmp.lt.s32.totalorder %s534_s17, %s528_s13 }
  0x19   : > { %v453_v4 = vld [vmem:[%s138_s27] ss:$0 sm:$0xff]  ;;  %v454_v5 = vld [vmem:[%s138_s27 + $0x1] ss:$0 sm:$0xff]  ;;  %p530_p12 = pnand %p529_p11, %p657_p5 }
  0x1a   : > { %p537_p2 = por %p536_p1, %p535_p0 }
  0x1b   : > { %p531_p13 = pneg %p530_p12 }
  0x1d   : > { %p538_p3 = pnand %p537_p2, %p531_p13 }
  0x8e   : > { %v145_v3 = vpop.permute.xlu0 %144 }
  0x8f   : > { %v151_v7 = vmul.f32 %v453_v4, %v145_v3 }
  0x93   : > { %v154_v6 = vpop.permute.xlu0 %153 }
  0x94   : > { %v160_v8 = vmul.f32 %v454_v5, %v154_v6 }
  0x96   : > { %v675_v9 = vadd.f32 %v160_v8, %v151_v7 }
  0x98   : > { %v165_v10 = vand.u32 2139095040, %v675_v9  ;;  %v162_v14 = vand.u32 2147483647, %v675_v9  ;;  %vm164_vm7 = vcmp.lt.s32.totalorder %v675_v9, 0  ;;  %vm254_vm15 = vweird.f32 %v675_v9 }
  0x9a   : > { %v166_v11 = vshrl.u32 %v165_v10, 23  ;;  %v169_v17 = vand.u32 8388607, %v162_v14  ;;  %vm163_vm8 = vcmp.le.f32.partialorder %v162_v14, 0.7853982 }
  0x9c   : > { %v455_v12 = vadd.s32 4294967169, %v166_v11  ;;  %v170_v36 = vor.u32 8388608, %v169_v17 }
  0x9e   : > { %v172_v13 = vadd.s32 1, %v455_v12  ;;  %v210_v50 = vshll.u32 %v170_v36, 8 }
  0xa0   : > { %vm173_vm0 = vcmp.gt.s32.totalorder %v172_v13, 0 }
  0xa1   : > { %v174_v15 = vsel %vm173_vm0, %v172_v13, 0 }
  0xa2   : > { %v176_v16 = vand.u32 31, %v174_v15  ;;  %v175_v19 = vshrl.u32 %v174_v15, 5 }
  0xa4   : > { %v177_v18 = vsub.s32 32, %v176_v16  ;;  %v179_v21 = vshll.u32 %v594_v20, %v176_v16  ;;  %v182_v23 = vshll.u32 %v595_v22, %v176_v16  ;;  %v185_v27 = vshll.u32 %v596_v25, %v176_v16 }
  0xa5   : > { %v188_v30 = vshll.u32 %v597_v28, %v176_v16  ;;  %v191_v33 = vshll.u32 %v598_v31, %v176_v16  ;;  %vm194_vm1 = vcmp.lt.s32.totalorder %v175_v19, 1  ;;  %vm197_vm2 = vcmp.lt.s32.totalorder %v175_v19, 4 }
  0xa6   : > { %v180_v24 = vshrl.u32 %v595_v22, %v177_v18  ;;  %v183_v26 = vshrl.u32 %v596_v25, %v177_v18  ;;  %v186_v29 = vshrl.u32 %v597_v28, %v177_v18  ;;  %v189_v32 = vshrl.u32 %v598_v31, %v177_v18 }
  0xa7   : > { %v192_v35 = vshrl.u32 %v599_v34, %v177_v18  ;;  %v178_v45 = vshrl.u32 %v594_v20, %v177_v18  ;;  %vm196_vm3 = vcmp.lt.s32.totalorder %v175_v19, 3  ;;  %vm195_vm4 = vcmp.lt.s32.totalorder %v175_v19, 2 }
  0xa8   : > { %v181_v37 = vor.u32 %v180_v24, %v179_v21  ;;  %v184_v38 = vor.u32 %v183_v26, %v182_v23  ;;  %v187_v39 = vor.u32 %v186_v29, %v185_v27  ;;  %v190_v40 = vor.u32 %v189_v32, %v188_v30 }
  0xa9   : > { %v193_v41 = vor.u32 %v192_v35, %v191_v33 }
  0xaa   : > { %v199_v42 = vsel %vm197_vm2, %v187_v39, 2102212464  ;;  %v202_v43 = vsel %vm194_vm1, %v181_v37, %v184_v38  ;;  %v206_v44 = vsel %vm194_vm1, %v184_v38, %v187_v39  ;;  %v203_v46 = vsel %vm197_vm2, %v190_v40, 920167782 }
  0xab   : > { %v207_v47 = vsel %vm197_vm2, %v193_v41, 1326507024  ;;  %v204_v48 = vsel %vm196_vm3, %v187_v39, %v203_v46  ;;  %v198_v51 = vsel %vm194_vm1, %v178_v45, %v181_v37  ;;  %v200_v52 = vsel %vm196_vm3, %v184_v38, %v199_v42 }
  0xac   : > { %v208_v49 = vsel %vm196_vm3, %v190_v40, %v207_v47  ;;  %v205_v53 = vsel %vm195_vm4, %v202_v43, %v204_v48  ;;  %v201_v59 = vsel %vm195_vm4, %v198_v51, %v200_v52 }
  0xad   : > { %v209_v54 = vsel %vm195_vm4, %v206_v44, %v208_v49  ;;  %v684_v57 = vmul.u32.u64.low %v210_v50, %v205_v53  ;;  %v685_v58 = vmul.u32.u64.high %v210_v50, %v205_v53, %v684_v57  ;;  %v217_v61 = vmul.u32 %v210_v50, %v201_v59 }
  0xae   : > { %v681_v55 = vmul.u32.u64.low %v210_v50, %v209_v54  ;;  %v682_v56 = vmul.u32.u64.high %v210_v50, %v209_v54, %v681_v55 }
  0xaf   : > { %v220_v60 = vadd.s32 1, %v685_v58 }
  0xb0   : > { %vm219_vm5 = vc.u32 %v682_v56, %v684_v57  ;;  %v218_v10 = vadd.s32 %v684_v57, %v682_v56 }
  0xb1   : > { %v221_v62 = vsel %vm219_vm5, %v220_v60, %v685_v58 }
  0xb2   : > { %v222_v63 = vadd.s32 %v221_v62, %v217_v61 }
  0xb4   : > { %v223_v0 = vadd.s32 536870912, %v222_v63 }
  0xb6   : > { %v224_v1 = vshrl.u32 %v223_v0, 30 }
  0xb8   : > { %v225_v2 = vshll.u32 %v224_v1, 30  ;;  %v248_v23 = vsub.s32 4, %v224_v1 }
  0xba   : > { %v226_v3 = vsub.s32 %v222_v63, %v225_v2  ;;  %v249_v26 = vsel %vm164_vm7, %v248_v23, %v224_v1 }
  0xbb   : > { %v251_v28 = vsel %vm163_vm8, 0, %v249_v26 }
  0xbc   : > { %v228_v4 = vsub.s32 0, %v226_v3  ;;  %v255_v29 = vadd.s32 3, %v251_v28  ;;  %v360_v31 = vand.u32 3, %v251_v28 }
  0xbe   : > { %v456_v5 = vmin.u32 %v228_v4, %v226_v3  ;;  %v256_v30 = vand.u32 3, %v255_v29  ;;  %vm365_vm10 = vcmp.eq.s32.totalorder %v360_v31, 2  ;;  %vm362_vm12 = vcmp.eq.s32.totalorder %v360_v31, 0 }
  0xbf   : > { %vm361_vm14 = vcmp.lt.s32.totalorder %v360_v31, 2 }
  0xc0   : > { %v230_v6 = vclz %v456_v5  ;;  %vm261_vm9 = vcmp.eq.s32.totalorder %v256_v30, 2  ;;  %vm258_vm11 = vcmp.eq.s32.totalorder %v256_v30, 0  ;;  %vm257_vm13 = vcmp.lt.s32.totalorder %v256_v30, 2 }
  0xc2   : > { %v457_v7 = vadd.s32 4294967294, %v230_v6 }
  0xc4   : > { %vm458_vm6 = vcmp.lt.s32.totalorder %v457_v7, 0 }
  0xc5   : > { %v233_v8 = vsel %vm458_vm6, 0, %v457_v7 }
  0xc6   : > { %v234_v11 = vsub.s32 32, %v233_v8  ;;  %v238_v12 = vsub.s32 4294967266, %v233_v8  ;;  %v235_v13 = vshll.u32 %v226_v3, %v233_v8 }
  0xc8   : > { %v236_v15 = vshrl.u32 %v218_v10, %v234_v11  ;;  %v239_v16 = vadd.s32 127, %v238_v12 }
  0xca   : > { %v237_v17 = vor.u32 %v236_v15, %v235_v13  ;;  %v240_v18 = vshll.u32 %v239_v16, 23 }
  0xcc   : > { %v241_v19 = vor.u32 4788187, %v240_v18  ;;  %v244_v21 = vcvt.s32.f32 %v237_v17 }
  0xce   : > { %v242_v20 = vand.u32 2147483647, %v241_v19 }
  0xd0   : > { %v245_v22 = vmul.f32 %v244_v21, %v242_v20 }
  0xd2   : > { %v246_v24 = vxor.u32 2147483648, %v245_v22 }
  0xd4   : > { %v247_v25 = vsel %vm164_vm7, %v246_v24, %v245_v22 }
  0xd5   : > { %v250_v27 = vsel %vm163_vm8, %v675_v9, %v247_v25 }
  0xd6   : > { %524 = vcosq.f32 %v250_v27 }
  0xd7   : > { %526 = vsinq.f32 %v250_v27 }
  0xe0   : > { %v525_v32 = vpop.eup %524 }
  0xe1   : > { %v527_v33 = vpop.eup %526  ;;  %v262_v34 = vxor.u32 2147483648, %v525_v32 }
  0xe2   : > { %v259_v14 = vxor.u32 2147483648, %v527_v33 }
  0xe3   : > { %v263_v35 = vsel %vm261_vm9, %v262_v34, %v527_v33  ;;  %v367_v36 = vsel %vm365_vm10, %v262_v34, %v527_v33 }
  0xe4   : > { %v260_v37 = vsel %vm258_vm11, %v525_v32, %v259_v14  ;;  %v364_v38 = vsel %vm362_vm12, %v525_v32, %v259_v14 }
  0xe5   : > { %v264_v39 = vsel %vm257_vm13, %v260_v37, %v263_v35  ;;  %v368_v40 = vsel %vm361_vm14, %v364_v38, %v367_v36 }
  0xe6   : > { %v265_v41 = vsel %vm254_vm15, nan, %v264_v39  ;;  %v369_v42 = vsel %vm254_vm15, nan, %v368_v40 }
  0xe7   : > { %266 = vst [vmem:[%s134_s3] sm:$0xf] %v265_v41  ;;  %463 = vst [vmem:[%s134_s3 + $0x4] sm:$0xf] %v369_v42 }
  0xe8   : > { %541 = shalt.err (!%p538_p3)
}
  0xe9   : > { %s542_s21 = scalar_lea.hbm %s702_s7, 128  ;;  %s546_s24 = scalar_lea.hbm %s752_s2, 256 }
  0xea   : > { %p543_p4 = scmp.ne.s32.totalorder %s702_s7, %s542_s21  ;;  %p547_p9 = scmp.lt.u32.totalorder %s702_s7, %s752_s2 }
  0xeb   : > { %p548_p10 = scmp.lt.u32.totalorder %s546_s24, %s542_s21  ;;  %p550_p12 = scmp.lt.u32.totalorder %s542_s21, %s702_s7 }
  0xec   : > { %p544_p7 = pnand %p543_p4, %p657_p5 }
  0xed   : > { %p549_p11 = por %p548_p10, %p547_p9 }
  0xee   : > { %p545_p8 = pneg %p544_p7 }
  0xef   : > { %p551_p13 = por %p550_p12, %p549_p11 }
  0xf1   : > { %p552_p0 = pnand %p551_p13, %p545_p8 }
  0xf3   : > { %555 = shalt.err (!%p552_p0)
}
  0xf4   : > { %s601_s27 = smov 64   ;;  %s602_s28 = smov 128  }
  0xf5   : > { %s603_s29 = smov 4  }
  0xf6   : > { %472 = dma.vmem_to_hbm [thread:$0]  (%p657_p5), %s704_s4, 128, %s702_s7, %s709_s8, %s601_s27, %s602_s28, %s603_s29  }
  0xf7 PF: > { %p478_p1 = scmp.ge.s32.totalorder %s590_s12, 2  ;;  %s400_s30 = sand.u32 1, %s578_s9  }
  0xf8   : > { %s401_s3 = scalar_lea.sflag [#allocation3], %s400_s30 }
  0xf9   : > { %p475_p2 = pnand %p478_p1, %p661_p6 }
  0xfb   : > { %573 = dma.done.wait (!%p475_p2), %s401_s3, 128  }
  0xfc   : > { %575 = vsyncadd (!%p475_p2), %s401_s3, 4294967168  ;;  %p12_p3 = scmp.ge.s32.totalorder %s644_s15, 4   ;;  %s755_s9 = smov %s582_s10 }
  0xfd   : > { %s756_s10 = smov %s586_s11  ;;  %s757_s11 = smov %s655_s18 }
  0xfe   : > { %s758_s12 = smov %s644_s15  ;;  %14 = sbr.rel (!%p12_p3) target bundleno = 3 (0x3), region = 64 }
 0x105   :  { %406 = vsyncpa [#allocation3], 1 }
 0x106   :  { %408 = vsyncpa [#allocation3 + $0x1], 1 }

</bundles_post_ra>
